<compile_context>
chip_gen: v7x
topology: tpu7x:2x2x1
jax: 0.10.0
libtpu: 0.0.40
codegen_flags: <defaults>
</compile_context>

<pallas_src>
import jax
import jax.numpy as jnp
from jax.experimental import pallas as pl
from jax.experimental.pallas import tpu as pltpu

SEQ, BATCH = 8, 2
IN1, H1, H2 = 3, 5, 10

# ---- static layout of the packed parameter slab (rows, 128 lanes wide) ----
# weight blocks start on 8-row (sublane-tile) boundaries; everything starts
# at lane 0 so no in-kernel lane rotations are needed.
ROW_WIH1 = 0    # (IN1, H1)  = W_ih1^T
ROW_WHH1 = 8    # (H1, H1)   = W_hh1^T
ROW_WIH2 = 16   # (H1, H2)   = W_ih2^T
ROW_B1 = 24     # (1, H1)    = b_ih1 + b_hh1   (folded)
ROW_B2 = 25     # (1, H2)    = b_ih2 + b_hh2   (folded)
ROW_W3 = 26     # (1, H2)    = W3 row (Linear(10,1) weight)
ROW_B3 = 27     # (1, 1)     = b3
SLAB_ROWS, SLAB_LANES = 32, 128


def htwnet_kernel(x_ref, p_ref, out_ref):
    # Static slices of the single parameter slab (no per-parameter DMAs).
    w_ih1 = p_ref[ROW_WIH1:ROW_WIH1 + IN1, 0:H1]      # (3, 5)
    w_hh1 = p_ref[ROW_WHH1:ROW_WHH1 + H1, 0:H1]       # (5, 5)
    w_ih2 = p_ref[ROW_WIH2:ROW_WIH2 + H1, 0:H2]       # (5, 10)
    b1 = p_ref[ROW_B1:ROW_B1 + 1, 0:H1]               # (1, 5)
    b2 = p_ref[ROW_B2:ROW_B2 + 1, 0:H2]               # (1, 10)
    w3 = p_ref[ROW_W3:ROW_W3 + 1, 0:H2]               # (1, 10)
    b3 = p_ref[ROW_B3:ROW_B3 + 1, 0:1]                # (1, 1)

    # ---- layer_1: hoisted input projection for all timesteps at once ----
    # x_ref is (SEQ*BATCH, IN1); both layer-1 biases are already folded in b1.
    xp = jnp.dot(x_ref[...], w_ih1,
                 preferred_element_type=jnp.float32) + b1      # (SEQ*B, H1)

    # ---- layer_1 recurrence: only tanh + h @ W_hh1 on the critical path ----
    # t = 0: h0 = 0, so the recurrent matmul vanishes.
    h = jnp.tanh(xp[0:BATCH, :])
    for t in range(1, SEQ):  # static trip count, fully unrolled
        h = jnp.tanh(
            xp[t * BATCH:(t + 1) * BATCH, :]
            + jnp.dot(h, w_hh1, preferred_element_type=jnp.float32))

    # ---- layer_2: single step on the (B, 5) hidden state, h0 = 0 ----
    # (h0 @ W_hh2 == 0, so only the input projection + folded bias remain)
    h2 = jnp.tanh(
        jnp.dot(h, w_ih2, preferred_element_type=jnp.float32) + b2)  # (B, H2)

    # ---- layer_3: Linear(10 -> 1) + ReLU as VPU mul + lane reduce ----
    y = jnp.sum(h2 * w3, axis=-1, keepdims=True) + b3                # (B, 1)
    out_ref[0] = jnp.maximum(y, 0.0)


def init_params(key):
    """Deterministic parameter init mirroring the PyTorch module's shapes."""
    ks = jax.random.split(key, 9)
    return {
        # CustomRNN(3, 5): W_ih (5,3), W_hh (5,5), b_ih (5,), b_hh (5,)
        "W_ih1": jax.random.normal(ks[0], (H1, IN1), jnp.float32) * 0.1,
        "W_hh1": jax.random.normal(ks[1], (H1, H1), jnp.float32) * 0.1,
        "b_ih1": jax.random.normal(ks[2], (H1,), jnp.float32) * 0.1,
        "b_hh1": jax.random.normal(ks[3], (H1,), jnp.float32) * 0.1,
        # CustomRNN(5, 10): W_ih (10,5), b_ih (10,), b_hh (10,)
        # (W_hh2 is mathematically unused: the layer sees a length-1 sequence
        #  with h0 = 0, so the recurrent term is zero.)
        "W_ih2": jax.random.normal(ks[4], (H2, H1), jnp.float32) * 0.1,
        "b_ih2": jax.random.normal(ks[5], (H2,), jnp.float32) * 0.1,
        "b_hh2": jax.random.normal(ks[6], (H2,), jnp.float32) * 0.1,
        # Linear(10, 1): W (1,10), b (1,)
        "W3": jax.random.normal(ks[7], (1, H2), jnp.float32) * 0.1,
        "b3": jax.random.normal(ks[8], (1,), jnp.float32) * 0.1,
    }


def pack_params(params):
    """Pack all weights/biases into one padded (32, 128) fp32 slab.

    Weights are stored pre-transposed to (in, out); paired biases folded;
    the Linear weight is stored as a row.  Done ONCE, outside the per-call
    jit, so the forward pass never re-packs parameters.
    """
    slab = jnp.zeros((SLAB_ROWS, SLAB_LANES), jnp.float32)
    slab = slab.at[ROW_WIH1:ROW_WIH1 + IN1, 0:H1].set(params["W_ih1"].T)
    slab = slab.at[ROW_WHH1:ROW_WHH1 + H1, 0:H1].set(params["W_hh1"].T)
    slab = slab.at[ROW_WIH2:ROW_WIH2 + H1, 0:H2].set(params["W_ih2"].T)
    slab = slab.at[ROW_B1, 0:H1].set(params["b_ih1"] + params["b_hh1"])
    slab = slab.at[ROW_B2, 0:H2].set(params["b_ih2"] + params["b_hh2"])
    slab = slab.at[ROW_W3, 0:H2].set(params["W3"][0])
    slab = slab.at[ROW_B3, 0].set(params["b3"][0])
    return slab


@jax.jit
def htwnet_forward(x, slab):
    # Only two kernel inputs: the flattened activations and the param slab.
    x2d = x.reshape(SEQ * BATCH, IN1)
    vmem = pl.BlockSpec(memory_space=pltpu.MemorySpace.VMEM)
    return pl.pallas_call(
        htwnet_kernel,
        out_shape=jax.ShapeDtypeStruct((1, BATCH, 1), jnp.float32),
        in_specs=[vmem, vmem],
        out_specs=vmem,
    )(x2d, slab)


def htwnet_reference(x, params):
    """Pure-JAX reference of the same forward pass (for correctness check)."""
    h = jnp.zeros((BATCH, H1), jnp.float32)
    for t in range(SEQ):
        h = jnp.tanh(x[t] @ params["W_ih1"].T + params["b_ih1"]
                     + h @ params["W_hh1"].T + params["b_hh1"])
    h2 = jnp.tanh(h @ params["W_ih2"].T + params["b_ih2"] + params["b_hh2"])
    y = h2 @ params["W3"].T + params["b3"]
    return jnp.maximum(y, 0.0)[None]  # (1, B, 1)


if __name__ == "__main__":
    key = jax.random.PRNGKey(0)
    k_x, k_p = jax.random.split(key)
    x = jax.random.normal(k_x, (SEQ, BATCH, IN1), jnp.float32)
    params = init_params(k_p)

    slab = jax.block_until_ready(pack_params(params))   # pack once, reuse
    out = jax.block_until_ready(htwnet_forward(x, slab))
    ref = htwnet_reference(x, params)

    assert out.shape == (1, BATCH, 1), out.shape
    assert bool(jnp.all(jnp.isfinite(out)))
    assert bool(jnp.all(out >= 0.0))                      # post-ReLU
    assert bool(jnp.allclose(out, ref, atol=1e-5, rtol=1e-5))
    print("KERNEL_OK")
</pallas_src>

<mosaic_0001>
module attributes {stable_mosaic.version = 11 : i64} {
  func.func @htwnet_kernel(%arg0: memref<16x3xf32, #tpu.memory_space<vmem>>, %arg1: memref<32x128xf32, #tpu.memory_space<vmem>>, %arg2: memref<1x2x1xf32, #tpu.memory_space<vmem>>) attributes {dimension_semantics = [], scalar_prefetch = 0 : i64, scratch_operands = 0 : i64, tpu.core_type = #tpu.core_type<tc>} {
    %c0 = arith.constant 0 : index
    %c0_0 = arith.constant 0 : index
    %0 = vector.load %arg1[%c0, %c0_0] : memref<32x128xf32, #tpu.memory_space<vmem>>, vector<3x5xf32>
    %c8 = arith.constant 8 : index
    %c0_1 = arith.constant 0 : index
    %1 = vector.load %arg1[%c8, %c0_1] : memref<32x128xf32, #tpu.memory_space<vmem>>, vector<5x5xf32>
    %c16 = arith.constant 16 : index
    %c0_2 = arith.constant 0 : index
    %2 = vector.load %arg1[%c16, %c0_2] : memref<32x128xf32, #tpu.memory_space<vmem>>, vector<5x10xf32>
    %c24 = arith.constant 24 : index
    %c0_3 = arith.constant 0 : index
    %3 = vector.load %arg1[%c24, %c0_3] : memref<32x128xf32, #tpu.memory_space<vmem>>, vector<1x5xf32>
    %c25 = arith.constant 25 : index
    %c0_4 = arith.constant 0 : index
    %4 = vector.load %arg1[%c25, %c0_4] : memref<32x128xf32, #tpu.memory_space<vmem>>, vector<1x10xf32>
    %c26 = arith.constant 26 : index
    %c0_5 = arith.constant 0 : index
    %5 = vector.load %arg1[%c26, %c0_5] : memref<32x128xf32, #tpu.memory_space<vmem>>, vector<1x10xf32>
    %c27 = arith.constant 27 : index
    %c0_6 = arith.constant 0 : index
    %6 = vector.load %arg1[%c27, %c0_6] : memref<32x128xf32, #tpu.memory_space<vmem>>, vector<1x1xf32>
    %c0_7 = arith.constant 0 : index
    %c0_8 = arith.constant 0 : index
    %7 = vector.load %arg0[%c0_7, %c0_8] : memref<16x3xf32, #tpu.memory_space<vmem>>, vector<16x3xf32>
    %cst = arith.constant dense<0.000000e+00> : vector<16x5xf32>
    %8 = tpu.matmul %7, %0, %cst {dimension_numbers = #tpu.dot_dimension_numbers<[1], [0], [0], [1], [0, 0, 1, 1], [], []>} : vector<16x3xf32>, vector<3x5xf32>, vector<16x5xf32> -> vector<16x5xf32>
    %9 = vector.broadcast %3 : vector<1x5xf32> to vector<16x5xf32>
    %10 = arith.addf %8, %9 : vector<16x5xf32>
    %11 = vector.extract_strided_slice %10 {offsets = [0, 0], sizes = [2, 5], strides = [1, 1]} : vector<16x5xf32> to vector<2x5xf32>
    %12 = math.tanh %11 : vector<2x5xf32>
    %13 = vector.extract_strided_slice %10 {offsets = [2, 0], sizes = [2, 5], strides = [1, 1]} : vector<16x5xf32> to vector<2x5xf32>
    %cst_9 = arith.constant dense<0.000000e+00> : vector<2x5xf32>
    %14 = tpu.matmul %12, %1, %cst_9 {dimension_numbers = #tpu.dot_dimension_numbers<[1], [0], [0], [1], [0, 0, 1, 1], [], []>} : vector<2x5xf32>, vector<5x5xf32>, vector<2x5xf32> -> vector<2x5xf32>
    %15 = arith.addf %13, %14 : vector<2x5xf32>
    %16 = math.tanh %15 : vector<2x5xf32>
    %17 = vector.extract_strided_slice %10 {offsets = [4, 0], sizes = [2, 5], strides = [1, 1]} : vector<16x5xf32> to vector<2x5xf32>
    %cst_10 = arith.constant dense<0.000000e+00> : vector<2x5xf32>
    %18 = tpu.matmul %16, %1, %cst_10 {dimension_numbers = #tpu.dot_dimension_numbers<[1], [0], [0], [1], [0, 0, 1, 1], [], []>} : vector<2x5xf32>, vector<5x5xf32>, vector<2x5xf32> -> vector<2x5xf32>
    %19 = arith.addf %17, %18 : vector<2x5xf32>
    %20 = math.tanh %19 : vector<2x5xf32>
    %21 = vector.extract_strided_slice %10 {offsets = [6, 0], sizes = [2, 5], strides = [1, 1]} : vector<16x5xf32> to vector<2x5xf32>
    %cst_11 = arith.constant dense<0.000000e+00> : vector<2x5xf32>
    %22 = tpu.matmul %20, %1, %cst_11 {dimension_numbers = #tpu.dot_dimension_numbers<[1], [0], [0], [1], [0, 0, 1, 1], [], []>} : vector<2x5xf32>, vector<5x5xf32>, vector<2x5xf32> -> vector<2x5xf32>
    %23 = arith.addf %21, %22 : vector<2x5xf32>
    %24 = math.tanh %23 : vector<2x5xf32>
    %25 = vector.extract_strided_slice %10 {offsets = [8, 0], sizes = [2, 5], strides = [1, 1]} : vector<16x5xf32> to vector<2x5xf32>
    %cst_12 = arith.constant dense<0.000000e+00> : vector<2x5xf32>
    %26 = tpu.matmul %24, %1, %cst_12 {dimension_numbers = #tpu.dot_dimension_numbers<[1], [0], [0], [1], [0, 0, 1, 1], [], []>} : vector<2x5xf32>, vector<5x5xf32>, vector<2x5xf32> -> vector<2x5xf32>
    %27 = arith.addf %25, %26 : vector<2x5xf32>
    %28 = math.tanh %27 : vector<2x5xf32>
    %29 = vector.extract_strided_slice %10 {offsets = [10, 0], sizes = [2, 5], strides = [1, 1]} : vector<16x5xf32> to vector<2x5xf32>
    %cst_13 = arith.constant dense<0.000000e+00> : vector<2x5xf32>
    %30 = tpu.matmul %28, %1, %cst_13 {dimension_numbers = #tpu.dot_dimension_numbers<[1], [0], [0], [1], [0, 0, 1, 1], [], []>} : vector<2x5xf32>, vector<5x5xf32>, vector<2x5xf32> -> vector<2x5xf32>
    %31 = arith.addf %29, %30 : vector<2x5xf32>
    %32 = math.tanh %31 : vector<2x5xf32>
    %33 = vector.extract_strided_slice %10 {offsets = [12, 0], sizes = [2, 5], strides = [1, 1]} : vector<16x5xf32> to vector<2x5xf32>
    %cst_14 = arith.constant dense<0.000000e+00> : vector<2x5xf32>
    %34 = tpu.matmul %32, %1, %cst_14 {dimension_numbers = #tpu.dot_dimension_numbers<[1], [0], [0], [1], [0, 0, 1, 1], [], []>} : vector<2x5xf32>, vector<5x5xf32>, vector<2x5xf32> -> vector<2x5xf32>
    %35 = arith.addf %33, %34 : vector<2x5xf32>
    %36 = math.tanh %35 : vector<2x5xf32>
    %37 = vector.extract_strided_slice %10 {offsets = [14, 0], sizes = [2, 5], strides = [1, 1]} : vector<16x5xf32> to vector<2x5xf32>
    %cst_15 = arith.constant dense<0.000000e+00> : vector<2x5xf32>
    %38 = tpu.matmul %36, %1, %cst_15 {dimension_numbers = #tpu.dot_dimension_numbers<[1], [0], [0], [1], [0, 0, 1, 1], [], []>} : vector<2x5xf32>, vector<5x5xf32>, vector<2x5xf32> -> vector<2x5xf32>
    %39 = arith.addf %37, %38 : vector<2x5xf32>
    %40 = math.tanh %39 : vector<2x5xf32>
    %cst_16 = arith.constant dense<0.000000e+00> : vector<2x10xf32>
    %41 = tpu.matmul %40, %2, %cst_16 {dimension_numbers = #tpu.dot_dimension_numbers<[1], [0], [0], [1], [0, 0, 1, 1], [], []>} : vector<2x5xf32>, vector<5x10xf32>, vector<2x10xf32> -> vector<2x10xf32>
    %42 = vector.broadcast %4 : vector<1x10xf32> to vector<2x10xf32>
    %43 = arith.addf %41, %42 : vector<2x10xf32>
    %44 = math.tanh %43 : vector<2x10xf32>
    %45 = vector.broadcast %5 : vector<1x10xf32> to vector<2x10xf32>
    %46 = arith.mulf %44, %45 : vector<2x10xf32>
    %cst_17 = arith.constant dense<0.000000e+00> : vector<2xf32>
    %47 = vector.multi_reduction <add>, %46, %cst_17 [1] : vector<2x10xf32> to vector<2xf32>
    %48 = vector.shape_cast %47 : vector<2xf32> to vector<2x1xf32>
    %49 = vector.broadcast %6 : vector<1x1xf32> to vector<2x1xf32>
    %50 = arith.addf %48, %49 : vector<2x1xf32>
    %cst_18 = arith.constant 0.000000e+00 : f32
    %51 = vector.broadcast %cst_18 : f32 to vector<2x1xf32>
    %52 = arith.maximumf %50, %51 : vector<2x1xf32>
    %c0_19 = arith.constant 0 : index
    %c0_20 = arith.constant 0 : index
    %c0_21 = arith.constant 0 : index
    %53 = vector.load %arg2[%c0_19, %c0_20, %c0_21] : memref<1x2x1xf32, #tpu.memory_space<vmem>>, vector<1x2x1xf32>
    %54 = vector.shape_cast %53 : vector<1x2x1xf32> to vector<2x1xf32>
    %55 = vector.shape_cast %52 : vector<2x1xf32> to vector<1x2x1xf32>
    tpu.vector_store %arg2[%c0_19, %c0_20, %c0_21], %55 {strides = array<i32>} : memref<1x2x1xf32, #tpu.memory_space<vmem>>, vector<1x2x1xf32>,
    return
  }
}

</mosaic_0001>

<bundles_post_ra>
// kernel: htwnet_forward.1
= control target key start
LH: loop header
LB: loop body
LE: loop exit
PB: predicated region body
PF: predicated region fallthrough
CT: control target
= control target key end

     0   :  { %7 = vsyncpa [#allocation3], 0  ;;  %s916_s9 = smov [#allocation2]   ;;  %s1012_s0 = inlined_call_operand.vmem [shape: f32[16,3], index: 0, kind: input, shape index: {}]   ;;  %s1013_s1 = inlined_call_operand.hbm [shape: f32[32,128], index: 1, kind: input, shape index: {}]   ;;  %s1014_s2 = inlined_call_operand.vmem [shape: f32[1,2,1], index: 2, kind: output, shape index: {}]  }
   0x1   :  { %s15_s10 = sshll.u32 %s916_s9, 4  ;;  %s892_s13 = scalar_lea.hbm %s1013_s1, 512  ;;  %s16_s10 = int_to_ptr.vmem [resolvable:$true] %s15_s10 }
   0x2   :  { %p893_p0 = scmp.ne.s32.totalorder %s1013_s1, %s892_s13  ;;  %p896_p1 = scmp.lt.u32.totalorder %s892_s13, %s1013_s1 }
   0x4   :  { %p898_p2 = pnand %p896_p1, %p893_p0 }
   0x6   :  { %901 = shalt.err (!%p898_p2)
}
   0x7   :  { %s902_s18 = scalar_lea.vmem %s16_s10, 512  ;;  %p907_p4 = scmp.lt.s32.totalorder %s16_s10, %s16_s10 }
   0x8   :  { %p903_p3 = scmp.ne.s32.totalorder %s16_s10, %s902_s18  ;;  %p908_p5 = scmp.lt.s32.totalorder %s902_s18, %s902_s18 }
   0xa   :  { %p909_p6 = por %p908_p5, %p907_p4 }
   0xc   :  { %p910_p7 = pnand %p909_p6, %p903_p3 }
   0xe   :  { %913 = shalt.err (!%p910_p7)
}
   0xf   :  { %s917_s19 = smov 128   ;;  %s918_s20 = smov 8  }
  0x10   :  { %21 = dma.hbm_to_vmem [thread:$0]  %s1013_s1, 512, %s16_s10, [#allocation3], %s917_s19, %s917_s19, %s918_s20  }
  0x11   :  { %914 = dma.done.wait [#allocation3], 512  }
  0x12   :  { %915 = vsyncadd [#allocation3], 4294966784  ;;  %vm45_vm0 = vcmask 1042432   ;;  %vm38_vm1 = vcmask 23552   ;;  %v25_v0 = vld [vmem:[#allocation2] sm:$0x7] }
  0x13   :  { %v32_v1 = vld [vmem:[%s1012_s0] sm:$0xff]  ;;  %v33_v2 = vld [vmem:[%s1012_s0 + $0x8] sm:$0xff]  ;;  %824 = vmatprep.subr.msk.mxu0 %vm45_vm0, %v25_v0  ;;  %v954_v3 = vld [vmem:[#allocation2 + $0x8] sm:$0x1f]  ;;  %vm129_vm2 = vcmask 1044480   ;;  %v919_v4 = vmov 0.0  }
  0x14   :  { %826 = vmatprep.mubr.msk.f32.mxu0 %vm38_vm1, %v32_v1  ;;  %825 = vmatpush3.msk.msra.mxu0 %vm45_vm0, %v25_v0  ;;  %vm920_vm3 = vmmov 0   ;;  %v782_v5 = vld [vmem:[#allocation2 + $0x18] ss:$0 sm:$0xff]  ;;  %vm125_vm4 = vcmask 39936   ;;  %v27_v45 = vld [vmem:[#allocation2 + $0x10] sm:$0x1f] }
  0x15   :  { %827 = vmatmul.mubr.msk.f32.vlgmr.msra.gmra.mrb[0].mxu0 %vm38_vm1, %v33_v2  ;;  %829 = vmatprep.subr.mxu1 %v919_v4  ;;  %v800_v52 = vld [vmem:[#allocation2 + $0x19] ss:$0 sm:$0xff]  ;;  %v803_v56 = vld [vmem:[#allocation2 + $0x1a] ss:$0 sm:$0xff]  ;;  %vm765_vm5 = vcmask 74752   ;;  %vm775_vm6 = vcmask 1024  }
  0x16   :  { %831 = vmatprep.mubr.msk.f32.mxu1 %vm920_vm3, %v919_v4  ;;  %830 = vmatpush3.msk.msra.mxu1 %vm129_vm2, %v954_v3  ;;  %v804_v60 = vld [vmem:[#allocation2 + $0x1b] ss:$0 sm:$0xff] }
  0x17   :  { %834 = vmatprep.subr.mxu0 %v919_v4  ;;  %836 = vmatprep.mubr.msk.f32.mxu0 %vm920_vm3, %v919_v4 }
  0x18   :  { %835 = vmatpush3.msk.msra.mxu0 %vm129_vm2, %v954_v3  ;;  %839 = vmatprep.subr.mxu1 %v919_v4 }
  0x19   :  { %844 = vmatprep.subr.mxu0 %v919_v4 }
  0xe8   :  { %v828_v6 = vpop.f32.mrb[0].mxu0 }
  0xe9   :  { %v968_v7 = vadd.f32 %v828_v6, %v782_v5  ;;  %v115_v8 = vpop.f32.mrb[1].mxu0 }
  0xea   :  { %v116_v9 = vadd.f32 %v782_v5, %v115_v8 }
  0xec   :  { %874 = vtanh.f32 %v116_v9 }
  0xf6   :  { %v875_v10 = vpop.eup %874 }
  0xf7   :  { %832 = vmatmul.mubr.msk.f32.vlgmr.msra.gmra.mrb[0].mxu1 %vm125_vm4, %v875_v10 }
  0xf8   :  { %840 = vmatpush3.msk.msra.mxu1 %vm129_vm2, %v954_v3  ;;  %841 = vmatprep.mubr.msk.f32.mxu1 %vm920_vm3, %v919_v4 }
  0xf9   :  { %849 = vmatprep.subr.mxu1 %v919_v4 }
 0x1ca   :  { %v199_v11 = vpop.f32.mrb[0].mxu1 }
 0x1cb   :  { %v204_v12 = vrot.slane %v199_v11, 6  ;;  %v833_v13 = vpop.f32.mrb[1].mxu1 }
 0x1cd   :  { %v206_v14 = vadd.f32 %v204_v12, %v116_v9 }
 0x1cf   :  { %876 = vtanh.f32 %v206_v14 }
 0x1d9   :  { %v877_v15 = vpop.eup %876 }
 0x1da   :  { %v209_v16 = vrot.slane %v877_v15, 2 }
 0x1dc   :  { %837 = vmatmul.mubr.msk.f32.vlgmr.msra.gmra.mrb[2].mxu0 %vm125_vm4, %v209_v16 }
 0x1dd   :  { %845 = vmatpush3.msk.msra.mxu0 %vm129_vm2, %v954_v3  ;;  %846 = vmatprep.mubr.msk.f32.mxu0 %vm920_vm3, %v919_v4 }
 0x1de   :  { %854 = vmatprep.subr.mxu0 %v919_v4 }
 0x2af   :  { %v278_v17 = vpop.f32.mrb[2].mxu0 }
 0x2b0   :  { %v283_v18 = vrot.slane %v278_v17, 4  ;;  %v838_v19 = vpop.f32.mrb[3].mxu0 }
 0x2b2   :  { %v285_v20 = vadd.f32 %v283_v18, %v116_v9 }
 0x2b4   :  { %878 = vtanh.f32 %v285_v20 }
 0x2be   :  { %v879_v21 = vpop.eup %878 }
 0x2bf   :  { %v288_v22 = vrot.slane %v879_v21, 4 }
 0x2c1   :  { %842 = vmatmul.mubr.msk.f32.vlgmr.msra.gmra.mrb[2].mxu1 %vm125_vm4, %v288_v22 }
 0x2c2   :  { %850 = vmatpush3.msk.msra.mxu1 %vm129_vm2, %v954_v3  ;;  %851 = vmatprep.mubr.msk.f32.mxu1 %vm920_vm3, %v919_v4 }
 0x2c3   :  { %859 = vmatprep.subr.mxu1 %v919_v4 }
 0x394   :  { %v357_v23 = vpop.f32.mrb[2].mxu1 }
 0x395   :  { %v362_v24 = vrot.slane %v357_v23, 2  ;;  %v843_v25 = vpop.f32.mrb[3].mxu1 }
 0x397   :  { %v364_v26 = vadd.f32 %v362_v24, %v116_v9 }
 0x399   :  { %880 = vtanh.f32 %v364_v26 }
 0x3a3   :  { %v881_v27 = vpop.eup %880 }
 0x3a4   :  { %v367_v28 = vrot.slane %v881_v27, 6 }
 0x3a6   :  { %847 = vmatmul.mubr.msk.f32.vlgmr.msra.gmra.mrb[4].mxu0 %vm125_vm4, %v367_v28 }
 0x3a7   :  { %855 = vmatpush3.msk.msra.mxu0 %vm129_vm2, %v954_v3  ;;  %856 = vmatprep.mubr.msk.f32.mxu0 %vm920_vm3, %v919_v4 }
 0x3a8   :  { %864 = vmatprep.subr.mxu0 %v919_v4 }
 0x479   :  { %v436_v29 = vpop.f32.mrb[4].mxu0 }
 0x47a   :  { %v440_v30 = vadd.f32 %v436_v29, %v968_v7  ;;  %v848_v31 = vpop.f32.mrb[5].mxu0 }
 0x47c   :  { %882 = vtanh.f32 %v440_v30 }
 0x486   :  { %v883_v32 = vpop.eup %882 }
 0x487   :  { %852 = vmatmul.mubr.msk.f32.vlgmr.msra.gmra.mrb[4].mxu1 %vm125_vm4, %v883_v32 }
 0x488   :  { %860 = vmatpush3.msk.msra.mxu1 %vm129_vm2, %v954_v3  ;;  %861 = vmatprep.mubr.msk.f32.mxu1 %vm920_vm3, %v919_v4 }
 0x55a   :  { %v511_v33 = vpop.f32.mrb[4].mxu1 }
 0x55b   :  { %v516_v34 = vrot.slane %v511_v33, 6  ;;  %v853_v35 = vpop.f32.mrb[5].mxu1 }
 0x55d   :  { %v518_v36 = vadd.f32 %v516_v34, %v968_v7 }
 0x55f   :  { %884 = vtanh.f32 %v518_v36 }
 0x569   :  { %v885_v37 = vpop.eup %884 }
 0x56a   :  { %v521_v38 = vrot.slane %v885_v37, 2 }
 0x56c   :  { %857 = vmatmul.mubr.msk.f32.vlgmr.msra.gmra.mrb[6].mxu0 %vm125_vm4, %v521_v38 }
 0x56d   :  { %866 = vmatprep.mubr.msk.f32.mxu0 %vm920_vm3, %v919_v4  ;;  %865 = vmatpush3.msk.msra.mxu0 %vm129_vm2, %v27_v45 }
 0x63f   :  { %v590_v39 = vpop.f32.mrb[6].mxu0 }
 0x640   :  { %v595_v40 = vrot.slane %v590_v39, 4  ;;  %v858_v41 = vpop.f32.mrb[7].mxu0 }
 0x642   :  { %v597_v42 = vadd.f32 %v595_v40, %v968_v7 }
 0x644   :  { %886 = vtanh.f32 %v597_v42 }
 0x64e   :  { %v887_v43 = vpop.eup %886 }
 0x64f   :  { %v600_v44 = vrot.slane %v887_v43, 4 }
 0x651   :  { %862 = vmatmul.mubr.msk.f32.vlgmr.msra.gmra.mrb[6].mxu1 %vm125_vm4, %v600_v44 }
 0x724   :  { %v669_v46 = vpop.f32.mrb[6].mxu1 }
 0x725   :  { %v674_v47 = vrot.slane %v669_v46, 2  ;;  %v863_v48 = vpop.f32.mrb[7].mxu1 }
 0x727   :  { %v676_v49 = vadd.f32 %v674_v47, %v968_v7 }
 0x729   :  { %888 = vtanh.f32 %v676_v49 }
 0x733   :  { %v889_v50 = vpop.eup %888 }
 0x734   :  { %v683_v51 = vrot.slane %v889_v50, 6 }
 0x736   :  { %867 = vmatmul.mubr.msk.f32.vlgmr.msra.gmra.mrb[8].mxu0 %vm125_vm4, %v683_v51 }
 0x809   :  { %v755_v53 = vpop.f32.mrb[8].mxu0 }
 0x80a   :  { %v756_v54 = vadd.f32 %v800_v52, %v755_v53  ;;  %v868_v55 = vpop.f32.mrb[9].mxu0 }
 0x80c   :  { %890 = vtanh.f32 %v756_v54 }
 0x816   :  { %v891_v57 = vpop.eup %890 }
 0x817   :  { %v764_v58 = vmul.f32 %v891_v57, %v803_v56 }
 0x819   :  { %v766_v59 = vsel %vm765_vm5, %v764_v58, 0.0 }
 0x81a   :  { %767 = vadd.xlane.f32.xlu0 %v766_v59 }
 0x8a7   :  { %v768_v61 = vpop.xlane.xlu0 %767 }
 0x8a8   :  { %v773_v62 = vadd.f32 %v804_v60, %v768_v61 }
 0x8aa   :  { %v774_v63 = vmax.f32 %v773_v62, 0.0 }
 0x8ac   :  { %776 = vst.msk [vmem:[%s1014_s2] sm:$0x3] %vm775_vm6, %v774_v63 }
 0x8ad   :  { %781 = vsyncpa [#allocation3], 1 }

</bundles_post_ra>
